<compile_context>
chip_gen: v6e
topology: v6e:2x2x1
jax: 0.10.0
libtpu: 0.0.40
codegen_flags: <defaults>
</compile_context>

<pallas_src>
import jax
import jax.numpy as jnp
from jax.experimental import pallas as pl
from jax.experimental.pallas import tpu as pltpu


def _round_up(x, m):
    return ((x + m - 1) // m) * m


def _pad2d(a, rows, cols):
    """Pad a 2-D array up to (rows, cols); no-op (no XLA pad) if already sized."""
    pr, pc = rows - a.shape[0], cols - a.shape[1]
    if pr or pc:
        a = jnp.pad(a, ((0, pr), (0, pc)))
    return a


def _choose_tile(padded, target, align):
    """Largest multiple of `align` that divides `padded` and is <= target.

    `padded` must already be a multiple of `align`; falls back to `align`
    (divisor 1) when nothing larger fits.
    """
    units = padded // align
    target_units = max(1, target // align)
    best = 1
    for d in range(1, units + 1):
        if units % d == 0 and d <= target_units:
            best = d
    return best * align


def _vmem_budget_bytes():
    """Scoped-VMEM budget per chip: ~75% of physical (48 MiB v7x, 96 MiB v5e/v6e)."""
    try:
        cap = pltpu.get_tpu_info().vmem_capacity_bytes
        return min(100 * 1024 * 1024, int(cap * 3 // 4))
    except Exception:
        return 48 * 1024 * 1024  # v7x-safe fallback, works on all chips


# ---------------------------------------------------------------------------
# General tiled MXU kernel: y = x @ W_t + b with W_t already in (K, N) layout.
# Output block is resident across the K axis (same block index for every k),
# so we accumulate directly into it in f32 -- no scratch, no final copy.
# ---------------------------------------------------------------------------
def _linear_tiled_kernel(x_ref, w_ref, b_ref, o_ref):
    k = pl.program_id(2)

    @pl.when(k == 0)
    def _():
        o_ref[...] = jnp.broadcast_to(b_ref[...], o_ref.shape).astype(o_ref.dtype)

    o_ref[...] += jnp.dot(
        x_ref[...], w_ref[...], preferred_element_type=jnp.float32
    ).astype(o_ref.dtype)


# ---------------------------------------------------------------------------
# Degenerate-K kernel (in_features < 8): a K=1 contraction wastes the MXU's
# native depth and its push/pop latency, so compute the rank-K update on the
# VPU as broadcast multiply-adds.
# ---------------------------------------------------------------------------
def _linear_small_k_kernel(x_ref, w_ref, b_ref, o_ref):
    x = x_ref[...].astype(jnp.float32)            # (tm, K)
    w = w_ref[...].astype(jnp.float32)            # (K, tn)
    tm, kdim = x.shape
    tn = w.shape[1]
    acc = jnp.broadcast_to(b_ref[...].astype(jnp.float32), (tm, tn))
    for kk in range(kdim):                        # static tiny K -> unrolled
        acc = acc + x[:, kk:kk + 1] * w[kk:kk + 1, :]
    o_ref[...] = acc.astype(o_ref.dtype)


def linear_regression_forward(x, weight, bias, *, tm=512, tn=512, tk=2048):
    """Pallas forward of nn.Linear.

    x:      (B, in_features)            float32
    weight: (out_features, in_features) float32 (PyTorch layout)
    bias:   (out_features,)             float32
    returns (B, out_features)           float32
    """
    B, in_f = x.shape
    out_f = weight.shape[0]
    dtype = x.dtype
    vmem_limit = _vmem_budget_bytes()

    # Pad only to hardware alignment, never up to tile size.
    Bp = _round_up(B, 8)
    Np = _round_up(out_f, 128)

    if in_f < 8:
        # ---- VPU outer-product path (covers the module's input_size=1) ----
        tm_s = _choose_tile(Bp, min(tm, 512), 8)
        tn_s = _choose_tile(Np, min(tn, 512), 128)

        xp = _pad2d(x, Bp, in_f)
        wtp = _pad2d(weight.T, in_f, Np)           # (in_f, Np): tiny copy
        bp = _pad2d(bias.reshape(1, out_f), 1, Np)

        cost = pl.CostEstimate(
            flops=2 * Bp * in_f * Np + Bp * Np,
            transcendentals=0,
            bytes_accessed=4 * (Bp * in_f + in_f * Np + Np + Bp * Np),
        )
        out = pl.pallas_call(
            _linear_small_k_kernel,
            out_shape=jax.ShapeDtypeStruct((Bp, Np), dtype),
            grid_spec=pltpu.PrefetchScalarGridSpec(
                num_scalar_prefetch=0,
                grid=(Bp // tm_s, Np // tn_s),
                in_specs=[
                    pl.BlockSpec((tm_s, in_f), lambda i, j: (i, 0)),
                    pl.BlockSpec((in_f, tn_s), lambda i, j: (0, j)),
                    pl.BlockSpec((1, tn_s), lambda i, j: (0, j)),
                ],
                out_specs=pl.BlockSpec((tm_s, tn_s), lambda i, j: (i, j)),
            ),
            compiler_params=pltpu.CompilerParams(
                dimension_semantics=("parallel", "parallel"),
                vmem_limit_bytes=vmem_limit,
            ),
            cost_estimate=cost,
        )(xp, wtp, bp)
        if Bp == B and Np == out_f:
            return out
        return out[:B, :out_f]

    # ---- General tiled MXU path ----
    Kp = _round_up(in_f, 128)

    tm_t = _choose_tile(Bp, tm, 8)
    # Megacore: with a single M block, make sure the parallel N axis spans
    # >= 2 blocks so both v7x TensorCores get work.
    tn_target = tn
    if Bp // tm_t == 1 and Np >= 256:
        tn_target = min(tn_target, max(128, Np // 2))
    tn_t = _choose_tile(Np, tn_target, 128)
    tk_t = _choose_tile(Kp, tk, 128)

    def _vmem_bytes(tk_cur):
        # double-buffered x/w/bias tiles + (double-buffered, resident) f32 output
        return 4 * (2 * (tm_t * tk_cur + tk_cur * tn_t + tn_t) + 2 * tm_t * tn_t)

    while _vmem_bytes(tk_t) > vmem_limit and tk_t > 128:
        tk_t = _choose_tile(Kp, tk_t // 2, 128)

    xp = _pad2d(x, Bp, Kp)
    # Fuse the transpose into the padding copy: feed W as (Kp, Np) so the MXU
    # contracts LHS-last vs RHS-first with no per-tile XLU transpose.
    wtp = _pad2d(weight.T, Kp, Np)
    bp = _pad2d(bias.reshape(1, out_f), 1, Np)

    cost = pl.CostEstimate(
        flops=2 * Bp * Kp * Np + Bp * Np,
        transcendentals=0,
        bytes_accessed=4 * (Bp * Kp + Kp * Np + Np + Bp * Np),
    )
    out = pl.pallas_call(
        _linear_tiled_kernel,
        out_shape=jax.ShapeDtypeStruct((Bp, Np), dtype),
        grid_spec=pltpu.PrefetchScalarGridSpec(
            num_scalar_prefetch=0,
            grid=(Bp // tm_t, Np // tn_t, Kp // tk_t),
            in_specs=[
                pl.BlockSpec((tm_t, tk_t), lambda i, j, k: (i, k)),
                pl.BlockSpec((tk_t, tn_t), lambda i, j, k: (k, j)),
                pl.BlockSpec((1, tn_t), lambda i, j, k: (0, j)),
            ],
            out_specs=pl.BlockSpec((tm_t, tn_t), lambda i, j, k: (i, j)),
        ),
        compiler_params=pltpu.CompilerParams(
            dimension_semantics=("parallel", "parallel", "arbitrary"),
            vmem_limit_bytes=vmem_limit,
        ),
        cost_estimate=cost,
    )(xp, wtp, bp)
    if Bp == B and Np == out_f:
        return out
    return out[:B, :out_f]


if __name__ == "__main__":
    # Module spec: linear_regression(1, 10); small batch.
    input_size, output_size = 1, 10
    batch = 2

    key = jax.random.PRNGKey(0)
    k_w, k_b, k_x = jax.random.split(key, 3)

    # Deterministic init mimicking nn.Linear: U(-1/sqrt(in), 1/sqrt(in))
    bound = 1.0 / (input_size ** 0.5)
    weight = jax.random.uniform(k_w, (output_size, input_size),
                                minval=-bound, maxval=bound, dtype=jnp.float32)
    bias = jax.random.uniform(k_b, (output_size,),
                              minval=-bound, maxval=bound, dtype=jnp.float32)
    x = jax.random.normal(k_x, (batch, input_size), dtype=jnp.float32)

    yhat = jax.block_until_ready(linear_regression_forward(x, weight, bias))
    ref = x @ weight.T + bias
    assert yhat.shape == (batch, output_size)
    assert jnp.allclose(yhat, ref, atol=1e-5, rtol=1e-5)

    # General MXU path, unaligned K/N (exercises conditional padding).
    k_w2, k_b2, k_x2 = jax.random.split(jax.random.PRNGKey(1), 3)
    in_f2, out_f2, b2 = 40, 24, 10
    w2 = jax.random.normal(k_w2, (out_f2, in_f2), dtype=jnp.float32) * 0.1
    bb2 = jax.random.normal(k_b2, (out_f2,), dtype=jnp.float32) * 0.1
    x2 = jax.random.normal(k_x2, (b2, in_f2), dtype=jnp.float32)
    y2 = jax.block_until_ready(linear_regression_forward(x2, w2, bb2))
    ref2 = x2 @ w2.T + bb2
    assert jnp.allclose(y2, ref2, atol=1e-4, rtol=1e-4)

    # General MXU path with multiple K steps (exercises resident-output
    # accumulation) and the single-M-block / multi-N-block megacore heuristic.
    k_w3, k_b3, k_x3 = jax.random.split(jax.random.PRNGKey(2), 3)
    in_f3, out_f3, b3 = 384, 300, 100
    w3 = jax.random.normal(k_w3, (out_f3, in_f3), dtype=jnp.float32) * 0.05
    bb3 = jax.random.normal(k_b3, (out_f3,), dtype=jnp.float32) * 0.05
    x3 = jax.random.normal(k_x3, (b3, in_f3), dtype=jnp.float32)
    y3 = jax.block_until_ready(linear_regression_forward(x3, w3, bb3, tk=128))
    ref3 = x3 @ w3.T + bb3
    assert jnp.allclose(y3, ref3, atol=1e-3, rtol=1e-3)

    print("KERNEL_OK")
</pallas_src>

<mosaic_0001>
module attributes {stable_mosaic.version = 11 : i64} {
  func.func @_linear_small_k_kernel(%arg0: i32, %arg1: i32, %arg2: memref<8x1xf32, #tpu.memory_space<vmem>>, %arg3: memref<1x128xf32, #tpu.memory_space<vmem>>, %arg4: memref<1x128xf32, #tpu.memory_space<vmem>>, %arg5: memref<8x128xf32, #tpu.memory_space<vmem>>) attributes {dimension_semantics = [#tpu.dimension_semantics<parallel>, #tpu.dimension_semantics<parallel>], iteration_bounds = array<i64: 1, 1>, scalar_prefetch = 0 : i64, scratch_operands = 0 : i64, tpu.core_type = #tpu.core_type<tc>, window_params = [{transform_indices = @transform_0, window_bounds = array<i64: 8, 1>}, {transform_indices = @transform_1, window_bounds = array<i64: 1, 128>}, {transform_indices = @transform_2, window_bounds = array<i64: 1, 128>}, {transform_indices = @transform_3, window_bounds = array<i64: 8, 128>}]} {
    %c0 = arith.constant 0 : index
    %c0_0 = arith.constant 0 : index
    %0 = vector.load %arg2[%c0, %c0_0] : memref<8x1xf32, #tpu.memory_space<vmem>>, vector<8x1xf32>
    %c0_1 = arith.constant 0 : index
    %c0_2 = arith.constant 0 : index
    %1 = vector.load %arg3[%c0_1, %c0_2] : memref<1x128xf32, #tpu.memory_space<vmem>>, vector<1x128xf32>
    %c0_3 = arith.constant 0 : index
    %c0_4 = arith.constant 0 : index
    %2 = vector.load %arg4[%c0_3, %c0_4] : memref<1x128xf32, #tpu.memory_space<vmem>>, vector<1x128xf32>
    %3 = vector.shape_cast %2 : vector<1x128xf32> to vector<1x128xf32>
    %4 = vector.broadcast %3 : vector<1x128xf32> to vector<8x128xf32>
    %5 = vector.broadcast %0 : vector<8x1xf32> to vector<8x128xf32>
    %6 = vector.broadcast %1 : vector<1x128xf32> to vector<8x128xf32>
    %7 = arith.mulf %5, %6 : vector<8x128xf32>
    %8 = arith.addf %4, %7 : vector<8x128xf32>
    %c0_5 = arith.constant 0 : index
    %c0_6 = arith.constant 0 : index
    %9 = vector.load %arg5[%c0_5, %c0_6] : memref<8x128xf32, #tpu.memory_space<vmem>>, vector<8x128xf32>
    tpu.vector_store %arg5[%c0_5, %c0_6], %8 {strides = array<i32>} : memref<8x128xf32, #tpu.memory_space<vmem>>, vector<8x128xf32>,
    return
  }
  func.func @transform_0(%arg0: i32, %arg1: i32) -> (i32, i32) {
    %c0_i32 = arith.constant 0 : i32
    %c0_i32_0 = arith.constant 0 : i32
    return %arg0, %c0_i32 : i32, i32
  }
  func.func @transform_1(%arg0: i32, %arg1: i32) -> (i32, i32) {
    %c0_i32 = arith.constant 0 : i32
    %c0_i32_0 = arith.constant 0 : i32
    return %c0_i32, %arg1 : i32, i32
  }
  func.func @transform_2(%arg0: i32, %arg1: i32) -> (i32, i32) {
    %c0_i32 = arith.constant 0 : i32
    %c0_i32_0 = arith.constant 0 : i32
    return %c0_i32, %arg1 : i32, i32
  }
  func.func @transform_3(%arg0: i32, %arg1: i32) -> (i32, i32) {
    %c0_i32 = arith.constant 0 : i32
    return %arg0, %arg1 : i32, i32
  }
}

</mosaic_0001>

<bundles_post_ra>
// kernel: tpu_custom_call.1
= control target key start
LH: loop header
LB: loop body
LE: loop exit
PB: predicated region body
PF: predicated region fallthrough
CT: control target
= control target key end

     0   :  { %s113_s0 = inlined_call_operand.vmem [shape: f32[8,1], index: 0, kind: input, shape index: {}]   ;;  %s114_s1 = inlined_call_operand.vmem [shape: f32[1,128], index: 1, kind: input, shape index: {}]   ;;  %s115_s2 = inlined_call_operand.vmem [shape: f32[1,128], index: 2, kind: input, shape index: {}]   ;;  %s116_s3 = inlined_call_operand.hbm [shape: f32[8,128], index: 3, kind: output, shape index: {}]  }
   0x1   :  { %v15_v0 = vld [vmem:[%s113_s0] sm:$0xff] }
   0x2   :  { %8 = vsyncpa [#allocation3], 0  ;;  %v79_v1 = vmov 0   ;;  %v53_v2 = vld [vmem:[%s114_s1] ss:$0 sm:$0xff]  ;;  %s80_s18 = smov [#allocation2]  }
   0x3   :  { %56 = vset.pattern.permute.xlu0 %v79_v1  ;;  %v52_v4 = vld [vmem:[%s115_s2] ss:$0 sm:$0xff]  ;;  %s44_s19 = sshll.u32 %s80_s18, 4  ;;  %s45_s19 = int_to_ptr.vmem [resolvable:$true] %s44_s19 }
   0x4   :  { %26 = vperm.xlu0 %56, %v15_v0   ;;  %s57_s0 = scalar_lea.vmem %s45_s19, 128  ;;  %p62_p1 = scmp.lt.s32.totalorder %s45_s19, %s45_s19 }
   0x5   :  { %p58_p0 = scmp.ne.s32.totalorder %s45_s19, %s57_s0  ;;  %p63_p2 = scmp.lt.s32.totalorder %s57_s0, %s57_s0 }
   0x7   :  { %p64_p3 = por %p63_p2, %p62_p1 }
   0x9   :  { %p65_p4 = pnand %p64_p3, %p58_p0 }
  0x7f   :  { %v27_v3 = vpop.permute.xlu0 %26 }
  0x80   :  { %v35_v5 = vmul.f32 %v53_v2, %v27_v3 }
  0x82   :  { %v36_v6 = vadd.f32 %v52_v4, %v35_v5 }
  0x84   :  { %37 = vst [vmem:[#allocation2] sm:$0xff] %v36_v6 }
  0x85   :  { %68 = shalt.err (!%p65_p4)
}
  0x86   :  { %47 = dma.vmem_to_hbm [thread:$0]  %s45_s19, 128, %s116_s3, [#allocation3]  }
  0x87   :  { %77 = dma.done.wait [#allocation3], 128  }
  0x88   :  { %78 = vsyncadd [#allocation3], 4294967168 }
  0x89   :  { %51 = vsyncpa [#allocation3], 1 }

</bundles_post_ra>
